<compile_context>
chip_gen: v6e
topology: v6e:2x2x1
jax: 0.10.0
libtpu: 0.0.40
codegen_flags: <defaults>
</compile_context>

<pallas_src>
import functools
import math

import jax
import jax.numpy as jnp
from jax import lax
from jax.experimental import pallas as pl
from jax.experimental.pallas import tpu as pltpu  # noqa: F401  (TPU backend)


# ----------------------------------------------------------------------------
# Shared attention core (one batch element, all heads, static unroll).
#   q : (T, E) f32, already scaled     k, v : (S, E) f32
#   wot : (H, D, E) f32 = out_proj.weight.T split per head (sublane-aligned)
# returns (out_acc (T, E) f32 = attn @ out_w.T, head-averaged weights (T, S) f32)
# ----------------------------------------------------------------------------
def _attention_core(q, k, v, wot, num_heads):
    t, e = q.shape
    s = k.shape[0]
    d = e // num_heads
    dn_t = (((1,), (1,)), ((), ()))          # contract last dims: A @ B.T, no transpose op

    out_acc = jnp.zeros((t, e), jnp.float32)
    w_sum = jnp.zeros((t, s), jnp.float32)
    for h in range(num_heads):               # static unroll over heads
        lo = h * d
        qh = q[:, lo:lo + d]                 # (T, D)
        kh = k[:, lo:lo + d]                 # (S, D)
        vh = v[:, lo:lo + d]                 # (S, D)

        sc = lax.dot_general(qh, kh, dn_t, preferred_element_type=jnp.float32)   # (T, S)
        sc = sc - jnp.max(sc, axis=-1, keepdims=True)
        p = jnp.exp(sc)
        # exact reciprocal (EUP, off the VPU path): weights are a user-visible output
        p = p * pl.reciprocal(jnp.sum(p, axis=-1, keepdims=True), approx=False)

        w_sum = w_sum + p
        head_out = jnp.dot(p, vh, preferred_element_type=jnp.float32)            # (T, D)
        # Fold the out-projection in per head: no lane-axis concat of head outputs.
        out_acc = out_acc + jnp.dot(head_out, wot[h],
                                    preferred_element_type=jnp.float32)          # (T, E)
    return out_acc, w_sum * (1.0 / num_heads)


# ----------------------------------------------------------------------------
# Self-attention fast path (qkv_same): x DMA'd once, single fused QKV matmul.
#   x_ref  : (T, B, E)      wi_ref : (3E, E)   bi_ref : (1, 3E)
#   wot_ref: (H, D, E)      bo_ref : (1, E)
#   out_ref: (T, B, E)      aw_ref : (B, T, T)
# ----------------------------------------------------------------------------
def _mha_self_kernel(x_ref, wi_ref, bi_ref, wot_ref, bo_ref, out_ref, aw_ref,
                     *, num_heads, scale):
    t, b, e = x_ref.shape
    dn_t = (((1,), (1,)), ((), ()))

    wi = wi_ref[...]
    bi = bi_ref[...]
    wot = wot_ref[...]
    bo = bo_ref[...]

    for bb in range(b):                      # static unroll over (tiny) batch: no grid overhead
        xb = x_ref[:, bb, :]                                                     # (T, E)
        qkv = lax.dot_general(xb, wi, dn_t,
                              preferred_element_type=jnp.float32) + bi           # (T, 3E)
        q = qkv[:, :e] * scale               # head_dim^-0.5 and 1/sqrt(S) folded into one scale
        k = qkv[:, e:2 * e]
        v = qkv[:, 2 * e:]

        out, w_avg = _attention_core(q, k, v, wot, num_heads)
        out_ref[:, bb, :] = (out + bo).astype(out_ref.dtype)
        aw_ref[bb] = w_avg.astype(aw_ref.dtype)


# ----------------------------------------------------------------------------
# General path (query / key / value are distinct tensors).
# ----------------------------------------------------------------------------
def _mha_general_kernel(xq_ref, xk_ref, xv_ref, wi_ref, bi_ref, wot_ref, bo_ref,
                        out_ref, aw_ref, *, num_heads, scale):
    t, b, e = xq_ref.shape
    dn_t = (((1,), (1,)), ((), ()))

    wq = wi_ref[0:e, :]                      # sublane-aligned row slices of the stacked weight
    wk = wi_ref[e:2 * e, :]
    wv = wi_ref[2 * e:3 * e, :]
    bi = bi_ref[...]
    bq, bk, bv = bi[:, 0:e], bi[:, e:2 * e], bi[:, 2 * e:3 * e]
    wot = wot_ref[...]
    bo = bo_ref[...]

    for bb in range(b):
        q = (lax.dot_general(xq_ref[:, bb, :], wq, dn_t,
                             preferred_element_type=jnp.float32) + bq) * scale
        k = lax.dot_general(xk_ref[:, bb, :], wk, dn_t,
                            preferred_element_type=jnp.float32) + bk
        v = lax.dot_general(xv_ref[:, bb, :], wv, dn_t,
                            preferred_element_type=jnp.float32) + bv

        out, w_avg = _attention_core(q, k, v, wot, num_heads)
        out_ref[:, bb, :] = (out + bo).astype(out_ref.dtype)
        aw_ref[bb] = w_avg.astype(aw_ref.dtype)


# ----------------------------------------------------------------------------
# Wrapper: mirrors MultiheadAttention.forward; query/key/value are (T, B, E).
# Returns (output (T, B, E), head-averaged weights (B, T, S)).
# ----------------------------------------------------------------------------
def multihead_attention(query, key, value, in_proj_w, in_proj_b, out_w, out_b,
                        num_heads, attn_mask=None):
    # TODO(synk): attn_mask addition not implemented (DBPNet never passes one).
    assert attn_mask is None
    t, b, e = query.shape
    s = key.shape[0]
    assert key.shape == value.shape
    d = e // num_heads
    assert d * num_heads == e

    # module scaling (head_dim**-0.5) and the module's extra 1/sqrt(src_len),
    # both folded into one scalar applied to q before QK^T.
    scale = (d ** -0.5) * (s ** -0.5)

    # Tiny one-time parameter re-layouts (constant-folded under jit in real use).
    bi2 = in_proj_b.reshape(1, 3 * e)
    bo2 = out_b.reshape(1, e)
    wot = out_w.T.reshape(num_heads, d, e)   # per-head row-blocks of out_proj.weight.T

    out_shape = (jax.ShapeDtypeStruct((t, b, e), query.dtype),   # (Time, Batch, Channel)
                 jax.ShapeDtypeStruct((b, t, s), jnp.float32))   # head-averaged weights

    if (query is key) and (key is value):
        kern = functools.partial(_mha_self_kernel, num_heads=num_heads, scale=scale)
        out, w = pl.pallas_call(kern, out_shape=out_shape)(query, in_proj_w, bi2, wot, bo2)
    else:
        kern = functools.partial(_mha_general_kernel, num_heads=num_heads, scale=scale)
        out, w = pl.pallas_call(kern, out_shape=out_shape)(query, key, value,
                                                           in_proj_w, bi2, wot, bo2)
    return out, w


# ----------------------------------------------------------------------------
# Pure-JAX reference (correctness check only).
# ----------------------------------------------------------------------------
def reference(query, key, value, in_proj_w, in_proj_b, out_w, out_b, num_heads):
    t, b, e = query.shape
    s = key.shape[0]
    h = num_heads
    d = e // h
    hi = lax.Precision.HIGHEST
    q = jnp.einsum("tbe,fe->tbf", query, in_proj_w[:e], precision=hi) + in_proj_b[:e]
    k = jnp.einsum("tbe,fe->tbf", key, in_proj_w[e:2 * e], precision=hi) + in_proj_b[e:2 * e]
    v = jnp.einsum("tbe,fe->tbf", value, in_proj_w[2 * e:], precision=hi) + in_proj_b[2 * e:]
    q = q * (d ** -0.5)
    q = q.reshape(t, b * h, d).transpose(1, 0, 2)
    k = k.reshape(s, b * h, d).transpose(1, 0, 2)
    v = v.reshape(s, b * h, d).transpose(1, 0, 2)
    scores = jnp.einsum("btd,bsd->bts", q, k, precision=hi) / (s ** 0.5)
    w = jax.nn.softmax(scores, axis=-1)
    attn = jnp.einsum("bts,bsd->btd", w, v, precision=hi)
    attn = attn.transpose(1, 0, 2).reshape(t, b, e)
    out = jnp.einsum("tbe,fe->tbf", attn, out_w, precision=hi) + out_b
    w = w.reshape(b, h, t, s).sum(axis=1) / h
    return out, w


if __name__ == "__main__":
    T, B, E, H = 8, 2, 32, 4     # tgt_len = src_len = 8, batch = 2, embed = 32, heads = 4

    root = jax.random.PRNGKey(0)
    kx, ky, kw1, kw2, kb1, kb2 = jax.random.split(root, 6)

    x = jax.random.normal(kx, (T, B, E), jnp.float32)
    y = jax.random.normal(ky, (T, B, E), jnp.float32)

    # deterministic xavier-uniform weights (matches reset_parameters shapes);
    # small non-zero biases to actually exercise the bias path.
    a_in = math.sqrt(6.0 / (E + 3 * E))
    in_proj_w = jax.random.uniform(kw1, (3 * E, E), jnp.float32, -a_in, a_in)
    in_proj_b = 0.1 * jax.random.normal(kb1, (3 * E,), jnp.float32)
    a_out = math.sqrt(6.0 / (E + E))
    out_w = jax.random.uniform(kw2, (E, E), jnp.float32, -a_out, a_out)
    out_b = 0.1 * jax.random.normal(kb2, (E,), jnp.float32)

    # ---- self-attention (qkv_same) path: the configuration DBPNet uses ----
    out, attn_w = multihead_attention(x, x, x, in_proj_w, in_proj_b, out_w, out_b, H)
    out, attn_w = jax.block_until_ready((out, attn_w))
    ref_out, ref_w = reference(x, x, x, in_proj_w, in_proj_b, out_w, out_b, H)
    assert out.shape == (T, B, E) and attn_w.shape == (B, T, T)
    # Tolerance covers MXU-vs-XLA f32 matmul pass differences; softmax is exact.
    assert jnp.allclose(out, ref_out, atol=2e-3, rtol=2e-3)
    assert jnp.allclose(attn_w, ref_w, atol=2e-3, rtol=2e-3)

    # ---- general (cross-attention) path ----
    out2, attn_w2 = multihead_attention(x, y, y, in_proj_w, in_proj_b, out_w, out_b, H)
    out2, attn_w2 = jax.block_until_ready((out2, attn_w2))
    ref_out2, ref_w2 = reference(x, y, y, in_proj_w, in_proj_b, out_w, out_b, H)
    assert jnp.allclose(out2, ref_out2, atol=2e-3, rtol=2e-3)
    assert jnp.allclose(attn_w2, ref_w2, atol=2e-3, rtol=2e-3)

    print("KERNEL_OK")
</pallas_src>

<mosaic_0001>
module attributes {stable_mosaic.version = 11 : i64} {
  func.func @_mha_self_kernel(%arg0: memref<8x2x32xf32, #tpu.memory_space<vmem>>, %arg1: memref<96x32xf32, #tpu.memory_space<vmem>>, %arg2: memref<1x96xf32, #tpu.memory_space<vmem>>, %arg3: memref<4x8x32xf32, #tpu.memory_space<vmem>>, %arg4: memref<1x32xf32, #tpu.memory_space<vmem>>, %arg5: memref<8x2x32xf32, #tpu.memory_space<vmem>>, %arg6: memref<2x8x8xf32, #tpu.memory_space<vmem>>) attributes {dimension_semantics = [], scalar_prefetch = 0 : i64, scratch_operands = 0 : i64, tpu.core_type = #tpu.core_type<tc>} {
    %c0 = arith.constant 0 : index
    %c0_0 = arith.constant 0 : index
    %0 = vector.load %arg1[%c0, %c0_0] : memref<96x32xf32, #tpu.memory_space<vmem>>, vector<96x32xf32>
    %c0_1 = arith.constant 0 : index
    %c0_2 = arith.constant 0 : index
    %1 = vector.load %arg2[%c0_1, %c0_2] : memref<1x96xf32, #tpu.memory_space<vmem>>, vector<1x96xf32>
    %c0_3 = arith.constant 0 : index
    %c0_4 = arith.constant 0 : index
    %c0_5 = arith.constant 0 : index
    %2 = vector.load %arg3[%c0_3, %c0_4, %c0_5] : memref<4x8x32xf32, #tpu.memory_space<vmem>>, vector<4x8x32xf32>
    %c0_6 = arith.constant 0 : index
    %c0_7 = arith.constant 0 : index
    %3 = vector.load %arg4[%c0_6, %c0_7] : memref<1x32xf32, #tpu.memory_space<vmem>>, vector<1x32xf32>
    %c0_8 = arith.constant 0 : index
    %c0_9 = arith.constant 0 : index
    %c0_10 = arith.constant 0 : index
    %4 = vector.load %arg0[%c0_8, %c0_9, %c0_10] : memref<8x2x32xf32, #tpu.memory_space<vmem>>, vector<8x1x32xf32>
    %5 = vector.shape_cast %4 : vector<8x1x32xf32> to vector<8x32xf32>
    %cst = arith.constant dense<0.000000e+00> : vector<8x96xf32>
    %6 = tpu.matmul %5, %0, %cst {dimension_numbers = #tpu.dot_dimension_numbers<[1], [1], [0], [0], [0, 0, 1, 0], [], []>} : vector<8x32xf32>, vector<96x32xf32>, vector<8x96xf32> -> vector<8x96xf32>
    %7 = vector.broadcast %1 : vector<1x96xf32> to vector<8x96xf32>
    %8 = arith.addf %6, %7 : vector<8x96xf32>
    %9 = vector.extract_strided_slice %8 {offsets = [0, 0], sizes = [8, 32], strides = [1, 1]} : vector<8x96xf32> to vector<8x32xf32>
    %cst_11 = arith.constant 1.250000e-01 : f32
    %10 = vector.broadcast %cst_11 : f32 to vector<8x32xf32>
    %11 = arith.mulf %9, %10 : vector<8x32xf32>
    %12 = vector.extract_strided_slice %8 {offsets = [0, 32], sizes = [8, 32], strides = [1, 1]} : vector<8x96xf32> to vector<8x32xf32>
    %13 = vector.extract_strided_slice %8 {offsets = [0, 64], sizes = [8, 32], strides = [1, 1]} : vector<8x96xf32> to vector<8x32xf32>
    %cst_12 = arith.constant 0.000000e+00 : f32
    %14 = vector.broadcast %cst_12 : f32 to vector<8x32xf32>
    %cst_13 = arith.constant 0.000000e+00 : f32
    %15 = vector.broadcast %cst_13 : f32 to vector<8x8xf32>
    %16 = vector.extract_strided_slice %11 {offsets = [0, 0], sizes = [8, 8], strides = [1, 1]} : vector<8x32xf32> to vector<8x8xf32>
    %17 = vector.extract_strided_slice %12 {offsets = [0, 0], sizes = [8, 8], strides = [1, 1]} : vector<8x32xf32> to vector<8x8xf32>
    %18 = vector.extract_strided_slice %13 {offsets = [0, 0], sizes = [8, 8], strides = [1, 1]} : vector<8x32xf32> to vector<8x8xf32>
    %cst_14 = arith.constant dense<0.000000e+00> : vector<8x8xf32>
    %19 = tpu.matmul %16, %17, %cst_14 {dimension_numbers = #tpu.dot_dimension_numbers<[1], [1], [0], [0], [0, 0, 1, 0], [], []>} : vector<8x8xf32>, vector<8x8xf32>, vector<8x8xf32> -> vector<8x8xf32>
    %cst_15 = arith.constant dense<0xFF800000> : vector<8xf32>
    %20 = vector.multi_reduction <maximumf>, %19, %cst_15 [1] : vector<8x8xf32> to vector<8xf32>
    %21 = vector.shape_cast %20 : vector<8xf32> to vector<8x1xf32>
    %22 = vector.broadcast %21 : vector<8x1xf32> to vector<8x8xf32>
    %23 = arith.subf %19, %22 : vector<8x8xf32>
    %24 = math.exp %23 : vector<8x8xf32>
    %cst_16 = arith.constant dense<0.000000e+00> : vector<8xf32>
    %25 = vector.multi_reduction <add>, %24, %cst_16 [1] : vector<8x8xf32> to vector<8xf32>
    %26 = vector.shape_cast %25 : vector<8xf32> to vector<8x1xf32>
    %27 = tpu.reciprocal %26 : vector<8x1xf32> -> vector<8x1xf32>
    %28 = vector.broadcast %27 : vector<8x1xf32> to vector<8x8xf32>
    %29 = arith.mulf %24, %28 : vector<8x8xf32>
    %30 = arith.addf %15, %29 : vector<8x8xf32>
    %cst_17 = arith.constant dense<0.000000e+00> : vector<8x8xf32>
    %31 = tpu.matmul %29, %18, %cst_17 {dimension_numbers = #tpu.dot_dimension_numbers<[1], [0], [0], [1], [0, 0, 1, 1], [], []>} : vector<8x8xf32>, vector<8x8xf32>, vector<8x8xf32> -> vector<8x8xf32>
    %32 = vector.extract_strided_slice %2 {offsets = [0, 0, 0], sizes = [1, 8, 32], strides = [1, 1, 1]} : vector<4x8x32xf32> to vector<1x8x32xf32>
    %33 = vector.shape_cast %32 : vector<1x8x32xf32> to vector<8x32xf32>
    %cst_18 = arith.constant dense<0.000000e+00> : vector<8x32xf32>
    %34 = tpu.matmul %31, %33, %cst_18 {dimension_numbers = #tpu.dot_dimension_numbers<[1], [0], [0], [1], [0, 0, 1, 1], [], []>} : vector<8x8xf32>, vector<8x32xf32>, vector<8x32xf32> -> vector<8x32xf32>
    %35 = arith.addf %14, %34 : vector<8x32xf32>
    %36 = vector.extract_strided_slice %11 {offsets = [0, 8], sizes = [8, 8], strides = [1, 1]} : vector<8x32xf32> to vector<8x8xf32>
    %37 = vector.extract_strided_slice %12 {offsets = [0, 8], sizes = [8, 8], strides = [1, 1]} : vector<8x32xf32> to vector<8x8xf32>
    %38 = vector.extract_strided_slice %13 {offsets = [0, 8], sizes = [8, 8], strides = [1, 1]} : vector<8x32xf32> to vector<8x8xf32>
    %cst_19 = arith.constant dense<0.000000e+00> : vector<8x8xf32>
    %39 = tpu.matmul %36, %37, %cst_19 {dimension_numbers = #tpu.dot_dimension_numbers<[1], [1], [0], [0], [0, 0, 1, 0], [], []>} : vector<8x8xf32>, vector<8x8xf32>, vector<8x8xf32> -> vector<8x8xf32>
    %cst_20 = arith.constant dense<0xFF800000> : vector<8xf32>
    %40 = vector.multi_reduction <maximumf>, %39, %cst_20 [1] : vector<8x8xf32> to vector<8xf32>
    %41 = vector.shape_cast %40 : vector<8xf32> to vector<8x1xf32>
    %42 = vector.broadcast %41 : vector<8x1xf32> to vector<8x8xf32>
    %43 = arith.subf %39, %42 : vector<8x8xf32>
    %44 = math.exp %43 : vector<8x8xf32>
    %cst_21 = arith.constant dense<0.000000e+00> : vector<8xf32>
    %45 = vector.multi_reduction <add>, %44, %cst_21 [1] : vector<8x8xf32> to vector<8xf32>
    %46 = vector.shape_cast %45 : vector<8xf32> to vector<8x1xf32>
    %47 = tpu.reciprocal %46 : vector<8x1xf32> -> vector<8x1xf32>
    %48 = vector.broadcast %47 : vector<8x1xf32> to vector<8x8xf32>
    %49 = arith.mulf %44, %48 : vector<8x8xf32>
    %50 = arith.addf %30, %49 : vector<8x8xf32>
    %cst_22 = arith.constant dense<0.000000e+00> : vector<8x8xf32>
    %51 = tpu.matmul %49, %38, %cst_22 {dimension_numbers = #tpu.dot_dimension_numbers<[1], [0], [0], [1], [0, 0, 1, 1], [], []>} : vector<8x8xf32>, vector<8x8xf32>, vector<8x8xf32> -> vector<8x8xf32>
    %52 = vector.extract_strided_slice %2 {offsets = [1, 0, 0], sizes = [1, 8, 32], strides = [1, 1, 1]} : vector<4x8x32xf32> to vector<1x8x32xf32>
    %53 = vector.shape_cast %52 : vector<1x8x32xf32> to vector<8x32xf32>
    %cst_23 = arith.constant dense<0.000000e+00> : vector<8x32xf32>
    %54 = tpu.matmul %51, %53, %cst_23 {dimension_numbers = #tpu.dot_dimension_numbers<[1], [0], [0], [1], [0, 0, 1, 1], [], []>} : vector<8x8xf32>, vector<8x32xf32>, vector<8x32xf32> -> vector<8x32xf32>
    %55 = arith.addf %35, %54 : vector<8x32xf32>
    %56 = vector.extract_strided_slice %11 {offsets = [0, 16], sizes = [8, 8], strides = [1, 1]} : vector<8x32xf32> to vector<8x8xf32>
    %57 = vector.extract_strided_slice %12 {offsets = [0, 16], sizes = [8, 8], strides = [1, 1]} : vector<8x32xf32> to vector<8x8xf32>
    %58 = vector.extract_strided_slice %13 {offsets = [0, 16], sizes = [8, 8], strides = [1, 1]} : vector<8x32xf32> to vector<8x8xf32>
    %cst_24 = arith.constant dense<0.000000e+00> : vector<8x8xf32>
    %59 = tpu.matmul %56, %57, %cst_24 {dimension_numbers = #tpu.dot_dimension_numbers<[1], [1], [0], [0], [0, 0, 1, 0], [], []>} : vector<8x8xf32>, vector<8x8xf32>, vector<8x8xf32> -> vector<8x8xf32>
    %cst_25 = arith.constant dense<0xFF800000> : vector<8xf32>
    %60 = vector.multi_reduction <maximumf>, %59, %cst_25 [1] : vector<8x8xf32> to vector<8xf32>
    %61 = vector.shape_cast %60 : vector<8xf32> to vector<8x1xf32>
    %62 = vector.broadcast %61 : vector<8x1xf32> to vector<8x8xf32>
    %63 = arith.subf %59, %62 : vector<8x8xf32>
    %64 = math.exp %63 : vector<8x8xf32>
    %cst_26 = arith.constant dense<0.000000e+00> : vector<8xf32>
    %65 = vector.multi_reduction <add>, %64, %cst_26 [1] : vector<8x8xf32> to vector<8xf32>
    %66 = vector.shape_cast %65 : vector<8xf32> to vector<8x1xf32>
    %67 = tpu.reciprocal %66 : vector<8x1xf32> -> vector<8x1xf32>
    %68 = vector.broadcast %67 : vector<8x1xf32> to vector<8x8xf32>
    %69 = arith.mulf %64, %68 : vector<8x8xf32>
    %70 = arith.addf %50, %69 : vector<8x8xf32>
    %cst_27 = arith.constant dense<0.000000e+00> : vector<8x8xf32>
    %71 = tpu.matmul %69, %58, %cst_27 {dimension_numbers = #tpu.dot_dimension_numbers<[1], [0], [0], [1], [0, 0, 1, 1], [], []>} : vector<8x8xf32>, vector<8x8xf32>, vector<8x8xf32> -> vector<8x8xf32>
    %72 = vector.extract_strided_slice %2 {offsets = [2, 0, 0], sizes = [1, 8, 32], strides = [1, 1, 1]} : vector<4x8x32xf32> to vector<1x8x32xf32>
    %73 = vector.shape_cast %72 : vector<1x8x32xf32> to vector<8x32xf32>
    %cst_28 = arith.constant dense<0.000000e+00> : vector<8x32xf32>
    %74 = tpu.matmul %71, %73, %cst_28 {dimension_numbers = #tpu.dot_dimension_numbers<[1], [0], [0], [1], [0, 0, 1, 1], [], []>} : vector<8x8xf32>, vector<8x32xf32>, vector<8x32xf32> -> vector<8x32xf32>
    %75 = arith.addf %55, %74 : vector<8x32xf32>
    %76 = vector.extract_strided_slice %11 {offsets = [0, 24], sizes = [8, 8], strides = [1, 1]} : vector<8x32xf32> to vector<8x8xf32>
    %77 = vector.extract_strided_slice %12 {offsets = [0, 24], sizes = [8, 8], strides = [1, 1]} : vector<8x32xf32> to vector<8x8xf32>
    %78 = vector.extract_strided_slice %13 {offsets = [0, 24], sizes = [8, 8], strides = [1, 1]} : vector<8x32xf32> to vector<8x8xf32>
    %cst_29 = arith.constant dense<0.000000e+00> : vector<8x8xf32>
    %79 = tpu.matmul %76, %77, %cst_29 {dimension_numbers = #tpu.dot_dimension_numbers<[1], [1], [0], [0], [0, 0, 1, 0], [], []>} : vector<8x8xf32>, vector<8x8xf32>, vector<8x8xf32> -> vector<8x8xf32>
    %cst_30 = arith.constant dense<0xFF800000> : vector<8xf32>
    %80 = vector.multi_reduction <maximumf>, %79, %cst_30 [1] : vector<8x8xf32> to vector<8xf32>
    %81 = vector.shape_cast %80 : vector<8xf32> to vector<8x1xf32>
    %82 = vector.broadcast %81 : vector<8x1xf32> to vector<8x8xf32>
    %83 = arith.subf %79, %82 : vector<8x8xf32>
    %84 = math.exp %83 : vector<8x8xf32>
    %cst_31 = arith.constant dense<0.000000e+00> : vector<8xf32>
    %85 = vector.multi_reduction <add>, %84, %cst_31 [1] : vector<8x8xf32> to vector<8xf32>
    %86 = vector.shape_cast %85 : vector<8xf32> to vector<8x1xf32>
    %87 = tpu.reciprocal %86 : vector<8x1xf32> -> vector<8x1xf32>
    %88 = vector.broadcast %87 : vector<8x1xf32> to vector<8x8xf32>
    %89 = arith.mulf %84, %88 : vector<8x8xf32>
    %90 = arith.addf %70, %89 : vector<8x8xf32>
    %cst_32 = arith.constant dense<0.000000e+00> : vector<8x8xf32>
    %91 = tpu.matmul %89, %78, %cst_32 {dimension_numbers = #tpu.dot_dimension_numbers<[1], [0], [0], [1], [0, 0, 1, 1], [], []>} : vector<8x8xf32>, vector<8x8xf32>, vector<8x8xf32> -> vector<8x8xf32>
    %92 = vector.extract_strided_slice %2 {offsets = [3, 0, 0], sizes = [1, 8, 32], strides = [1, 1, 1]} : vector<4x8x32xf32> to vector<1x8x32xf32>
    %93 = vector.shape_cast %92 : vector<1x8x32xf32> to vector<8x32xf32>
    %cst_33 = arith.constant dense<0.000000e+00> : vector<8x32xf32>
    %94 = tpu.matmul %91, %93, %cst_33 {dimension_numbers = #tpu.dot_dimension_numbers<[1], [0], [0], [1], [0, 0, 1, 1], [], []>} : vector<8x8xf32>, vector<8x32xf32>, vector<8x32xf32> -> vector<8x32xf32>
    %95 = arith.addf %75, %94 : vector<8x32xf32>
    %cst_34 = arith.constant 2.500000e-01 : f32
    %96 = vector.broadcast %cst_34 : f32 to vector<8x8xf32>
    %97 = arith.mulf %90, %96 : vector<8x8xf32>
    %98 = vector.broadcast %3 : vector<1x32xf32> to vector<8x32xf32>
    %99 = arith.addf %95, %98 : vector<8x32xf32>
    %c0_35 = arith.constant 0 : index
    %c0_36 = arith.constant 0 : index
    %c0_37 = arith.constant 0 : index
    %100 = vector.load %arg5[%c0_35, %c0_36, %c0_37] : memref<8x2x32xf32, #tpu.memory_space<vmem>>, vector<8x1x32xf32>
    %101 = vector.shape_cast %100 : vector<8x1x32xf32> to vector<8x32xf32>
    %102 = vector.shape_cast %99 : vector<8x32xf32> to vector<8x1x32xf32>
    tpu.vector_store %arg5[%c0_35, %c0_36, %c0_37], %102 {strides = array<i32>} : memref<8x2x32xf32, #tpu.memory_space<vmem>>, vector<8x1x32xf32>,
    %c0_38 = arith.constant 0 : index
    %c0_39 = arith.constant 0 : index
    %c0_40 = arith.constant 0 : index
    %103 = vector.load %arg6[%c0_38, %c0_39, %c0_40] : memref<2x8x8xf32, #tpu.memory_space<vmem>>, vector<1x8x8xf32>
    %104 = vector.shape_cast %103 : vector<1x8x8xf32> to vector<8x8xf32>
    %105 = vector.shape_cast %97 : vector<8x8xf32> to vector<1x8x8xf32>
    tpu.vector_store %arg6[%c0_38, %c0_39, %c0_40], %105 {strides = array<i32>} : memref<2x8x8xf32, #tpu.memory_space<vmem>>, vector<1x8x8xf32>,
    %c0_41 = arith.constant 0 : index
    %c1 = arith.constant 1 : index
    %c0_42 = arith.constant 0 : index
    %106 = vector.load %arg0[%c0_41, %c1, %c0_42] : memref<8x2x32xf32, #tpu.memory_space<vmem>>, vector<8x1x32xf32>
    %107 = vector.shape_cast %106 : vector<8x1x32xf32> to vector<8x32xf32>
    %cst_43 = arith.constant dense<0.000000e+00> : vector<8x96xf32>
    %108 = tpu.matmul %107, %0, %cst_43 {dimension_numbers = #tpu.dot_dimension_numbers<[1], [1], [0], [0], [0, 0, 1, 0], [], []>} : vector<8x32xf32>, vector<96x32xf32>, vector<8x96xf32> -> vector<8x96xf32>
    %109 = vector.broadcast %1 : vector<1x96xf32> to vector<8x96xf32>
    %110 = arith.addf %108, %109 : vector<8x96xf32>
    %111 = vector.extract_strided_slice %110 {offsets = [0, 0], sizes = [8, 32], strides = [1, 1]} : vector<8x96xf32> to vector<8x32xf32>
    %cst_44 = arith.constant 1.250000e-01 : f32
    %112 = vector.broadcast %cst_44 : f32 to vector<8x32xf32>
    %113 = arith.mulf %111, %112 : vector<8x32xf32>
    %114 = vector.extract_strided_slice %110 {offsets = [0, 32], sizes = [8, 32], strides = [1, 1]} : vector<8x96xf32> to vector<8x32xf32>
    %115 = vector.extract_strided_slice %110 {offsets = [0, 64], sizes = [8, 32], strides = [1, 1]} : vector<8x96xf32> to vector<8x32xf32>
    %cst_45 = arith.constant 0.000000e+00 : f32
    %116 = vector.broadcast %cst_45 : f32 to vector<8x32xf32>
    %cst_46 = arith.constant 0.000000e+00 : f32
    %117 = vector.broadcast %cst_46 : f32 to vector<8x8xf32>
    %118 = vector.extract_strided_slice %113 {offsets = [0, 0], sizes = [8, 8], strides = [1, 1]} : vector<8x32xf32> to vector<8x8xf32>
    %119 = vector.extract_strided_slice %114 {offsets = [0, 0], sizes = [8, 8], strides = [1, 1]} : vector<8x32xf32> to vector<8x8xf32>
    %120 = vector.extract_strided_slice %115 {offsets = [0, 0], sizes = [8, 8], strides = [1, 1]} : vector<8x32xf32> to vector<8x8xf32>
    %cst_47 = arith.constant dense<0.000000e+00> : vector<8x8xf32>
    %121 = tpu.matmul %118, %119, %cst_47 {dimension_numbers = #tpu.dot_dimension_numbers<[1], [1], [0], [0], [0, 0, 1, 0], [], []>} : vector<8x8xf32>, vector<8x8xf32>, vector<8x8xf32> -> vector<8x8xf32>
    %cst_48 = arith.constant dense<0xFF800000> : vector<8xf32>
    %122 = vector.multi_reduction <maximumf>, %121, %cst_48 [1] : vector<8x8xf32> to vector<8xf32>
    %123 = vector.shape_cast %122 : vector<8xf32> to vector<8x1xf32>
    %124 = vector.broadcast %123 : vector<8x1xf32> to vector<8x8xf32>
    %125 = arith.subf %121, %124 : vector<8x8xf32>
    %126 = math.exp %125 : vector<8x8xf32>
    %cst_49 = arith.constant dense<0.000000e+00> : vector<8xf32>
    %127 = vector.multi_reduction <add>, %126, %cst_49 [1] : vector<8x8xf32> to vector<8xf32>
    %128 = vector.shape_cast %127 : vector<8xf32> to vector<8x1xf32>
    %129 = tpu.reciprocal %128 : vector<8x1xf32> -> vector<8x1xf32>
    %130 = vector.broadcast %129 : vector<8x1xf32> to vector<8x8xf32>
    %131 = arith.mulf %126, %130 : vector<8x8xf32>
    %132 = arith.addf %117, %131 : vector<8x8xf32>
    %cst_50 = arith.constant dense<0.000000e+00> : vector<8x8xf32>
    %133 = tpu.matmul %131, %120, %cst_50 {dimension_numbers = #tpu.dot_dimension_numbers<[1], [0], [0], [1], [0, 0, 1, 1], [], []>} : vector<8x8xf32>, vector<8x8xf32>, vector<8x8xf32> -> vector<8x8xf32>
    %134 = vector.extract_strided_slice %2 {offsets = [0, 0, 0], sizes = [1, 8, 32], strides = [1, 1, 1]} : vector<4x8x32xf32> to vector<1x8x32xf32>
    %135 = vector.shape_cast %134 : vector<1x8x32xf32> to vector<8x32xf32>
    %cst_51 = arith.constant dense<0.000000e+00> : vector<8x32xf32>
    %136 = tpu.matmul %133, %135, %cst_51 {dimension_numbers = #tpu.dot_dimension_numbers<[1], [0], [0], [1], [0, 0, 1, 1], [], []>} : vector<8x8xf32>, vector<8x32xf32>, vector<8x32xf32> -> vector<8x32xf32>
    %137 = arith.addf %116, %136 : vector<8x32xf32>
    %138 = vector.extract_strided_slice %113 {offsets = [0, 8], sizes = [8, 8], strides = [1, 1]} : vector<8x32xf32> to vector<8x8xf32>
    %139 = vector.extract_strided_slice %114 {offsets = [0, 8], sizes = [8, 8], strides = [1, 1]} : vector<8x32xf32> to vector<8x8xf32>
    %140 = vector.extract_strided_slice %115 {offsets = [0, 8], sizes = [8, 8], strides = [1, 1]} : vector<8x32xf32> to vector<8x8xf32>
    %cst_52 = arith.constant dense<0.000000e+00> : vector<8x8xf32>
    %141 = tpu.matmul %138, %139, %cst_52 {dimension_numbers = #tpu.dot_dimension_numbers<[1], [1], [0], [0], [0, 0, 1, 0], [], []>} : vector<8x8xf32>, vector<8x8xf32>, vector<8x8xf32> -> vector<8x8xf32>
    %cst_53 = arith.constant dense<0xFF800000> : vector<8xf32>
    %142 = vector.multi_reduction <maximumf>, %141, %cst_53 [1] : vector<8x8xf32> to vector<8xf32>
    %143 = vector.shape_cast %142 : vector<8xf32> to vector<8x1xf32>
    %144 = vector.broadcast %143 : vector<8x1xf32> to vector<8x8xf32>
    %145 = arith.subf %141, %144 : vector<8x8xf32>
    %146 = math.exp %145 : vector<8x8xf32>
    %cst_54 = arith.constant dense<0.000000e+00> : vector<8xf32>
    %147 = vector.multi_reduction <add>, %146, %cst_54 [1] : vector<8x8xf32> to vector<8xf32>
    %148 = vector.shape_cast %147 : vector<8xf32> to vector<8x1xf32>
    %149 = tpu.reciprocal %148 : vector<8x1xf32> -> vector<8x1xf32>
    %150 = vector.broadcast %149 : vector<8x1xf32> to vector<8x8xf32>
    %151 = arith.mulf %146, %150 : vector<8x8xf32>
    %152 = arith.addf %132, %151 : vector<8x8xf32>
    %cst_55 = arith.constant dense<0.000000e+00> : vector<8x8xf32>
    %153 = tpu.matmul %151, %140, %cst_55 {dimension_numbers = #tpu.dot_dimension_numbers<[1], [0], [0], [1], [0, 0, 1, 1], [], []>} : vector<8x8xf32>, vector<8x8xf32>, vector<8x8xf32> -> vector<8x8xf32>
    %154 = vector.extract_strided_slice %2 {offsets = [1, 0, 0], sizes = [1, 8, 32], strides = [1, 1, 1]} : vector<4x8x32xf32> to vector<1x8x32xf32>
    %155 = vector.shape_cast %154 : vector<1x8x32xf32> to vector<8x32xf32>
    %cst_56 = arith.constant dense<0.000000e+00> : vector<8x32xf32>
    %156 = tpu.matmul %153, %155, %cst_56 {dimension_numbers = #tpu.dot_dimension_numbers<[1], [0], [0], [1], [0, 0, 1, 1], [], []>} : vector<8x8xf32>, vector<8x32xf32>, vector<8x32xf32> -> vector<8x32xf32>
    %157 = arith.addf %137, %156 : vector<8x32xf32>
    %158 = vector.extract_strided_slice %113 {offsets = [0, 16], sizes = [8, 8], strides = [1, 1]} : vector<8x32xf32> to vector<8x8xf32>
    %159 = vector.extract_strided_slice %114 {offsets = [0, 16], sizes = [8, 8], strides = [1, 1]} : vector<8x32xf32> to vector<8x8xf32>
    %160 = vector.extract_strided_slice %115 {offsets = [0, 16], sizes = [8, 8], strides = [1, 1]} : vector<8x32xf32> to vector<8x8xf32>
    %cst_57 = arith.constant dense<0.000000e+00> : vector<8x8xf32>
    %161 = tpu.matmul %158, %159, %cst_57 {dimension_numbers = #tpu.dot_dimension_numbers<[1], [1], [0], [0], [0, 0, 1, 0], [], []>} : vector<8x8xf32>, vector<8x8xf32>, vector<8x8xf32> -> vector<8x8xf32>
    %cst_58 = arith.constant dense<0xFF800000> : vector<8xf32>
    %162 = vector.multi_reduction <maximumf>, %161, %cst_58 [1] : vector<8x8xf32> to vector<8xf32>
    %163 = vector.shape_cast %162 : vector<8xf32> to vector<8x1xf32>
    %164 = vector.broadcast %163 : vector<8x1xf32> to vector<8x8xf32>
    %165 = arith.subf %161, %164 : vector<8x8xf32>
    %166 = math.exp %165 : vector<8x8xf32>
    %cst_59 = arith.constant dense<0.000000e+00> : vector<8xf32>
    %167 = vector.multi_reduction <add>, %166, %cst_59 [1] : vector<8x8xf32> to vector<8xf32>
    %168 = vector.shape_cast %167 : vector<8xf32> to vector<8x1xf32>
    %169 = tpu.reciprocal %168 : vector<8x1xf32> -> vector<8x1xf32>
    %170 = vector.broadcast %169 : vector<8x1xf32> to vector<8x8xf32>
    %171 = arith.mulf %166, %170 : vector<8x8xf32>
    %172 = arith.addf %152, %171 : vector<8x8xf32>
    %cst_60 = arith.constant dense<0.000000e+00> : vector<8x8xf32>
    %173 = tpu.matmul %171, %160, %cst_60 {dimension_numbers = #tpu.dot_dimension_numbers<[1], [0], [0], [1], [0, 0, 1, 1], [], []>} : vector<8x8xf32>, vector<8x8xf32>, vector<8x8xf32> -> vector<8x8xf32>
    %174 = vector.extract_strided_slice %2 {offsets = [2, 0, 0], sizes = [1, 8, 32], strides = [1, 1, 1]} : vector<4x8x32xf32> to vector<1x8x32xf32>
    %175 = vector.shape_cast %174 : vector<1x8x32xf32> to vector<8x32xf32>
    %cst_61 = arith.constant dense<0.000000e+00> : vector<8x32xf32>
    %176 = tpu.matmul %173, %175, %cst_61 {dimension_numbers = #tpu.dot_dimension_numbers<[1], [0], [0], [1], [0, 0, 1, 1], [], []>} : vector<8x8xf32>, vector<8x32xf32>, vector<8x32xf32> -> vector<8x32xf32>
    %177 = arith.addf %157, %176 : vector<8x32xf32>
    %178 = vector.extract_strided_slice %113 {offsets = [0, 24], sizes = [8, 8], strides = [1, 1]} : vector<8x32xf32> to vector<8x8xf32>
    %179 = vector.extract_strided_slice %114 {offsets = [0, 24], sizes = [8, 8], strides = [1, 1]} : vector<8x32xf32> to vector<8x8xf32>
    %180 = vector.extract_strided_slice %115 {offsets = [0, 24], sizes = [8, 8], strides = [1, 1]} : vector<8x32xf32> to vector<8x8xf32>
    %cst_62 = arith.constant dense<0.000000e+00> : vector<8x8xf32>
    %181 = tpu.matmul %178, %179, %cst_62 {dimension_numbers = #tpu.dot_dimension_numbers<[1], [1], [0], [0], [0, 0, 1, 0], [], []>} : vector<8x8xf32>, vector<8x8xf32>, vector<8x8xf32> -> vector<8x8xf32>
    %cst_63 = arith.constant dense<0xFF800000> : vector<8xf32>
    %182 = vector.multi_reduction <maximumf>, %181, %cst_63 [1] : vector<8x8xf32> to vector<8xf32>
    %183 = vector.shape_cast %182 : vector<8xf32> to vector<8x1xf32>
    %184 = vector.broadcast %183 : vector<8x1xf32> to vector<8x8xf32>
    %185 = arith.subf %181, %184 : vector<8x8xf32>
    %186 = math.exp %185 : vector<8x8xf32>
    %cst_64 = arith.constant dense<0.000000e+00> : vector<8xf32>
    %187 = vector.multi_reduction <add>, %186, %cst_64 [1] : vector<8x8xf32> to vector<8xf32>
    %188 = vector.shape_cast %187 : vector<8xf32> to vector<8x1xf32>
    %189 = tpu.reciprocal %188 : vector<8x1xf32> -> vector<8x1xf32>
    %190 = vector.broadcast %189 : vector<8x1xf32> to vector<8x8xf32>
    %191 = arith.mulf %186, %190 : vector<8x8xf32>
    %192 = arith.addf %172, %191 : vector<8x8xf32>
    %cst_65 = arith.constant dense<0.000000e+00> : vector<8x8xf32>
    %193 = tpu.matmul %191, %180, %cst_65 {dimension_numbers = #tpu.dot_dimension_numbers<[1], [0], [0], [1], [0, 0, 1, 1], [], []>} : vector<8x8xf32>, vector<8x8xf32>, vector<8x8xf32> -> vector<8x8xf32>
    %194 = vector.extract_strided_slice %2 {offsets = [3, 0, 0], sizes = [1, 8, 32], strides = [1, 1, 1]} : vector<4x8x32xf32> to vector<1x8x32xf32>
    %195 = vector.shape_cast %194 : vector<1x8x32xf32> to vector<8x32xf32>
    %cst_66 = arith.constant dense<0.000000e+00> : vector<8x32xf32>
    %196 = tpu.matmul %193, %195, %cst_66 {dimension_numbers = #tpu.dot_dimension_numbers<[1], [0], [0], [1], [0, 0, 1, 1], [], []>} : vector<8x8xf32>, vector<8x32xf32>, vector<8x32xf32> -> vector<8x32xf32>
    %197 = arith.addf %177, %196 : vector<8x32xf32>
    %cst_67 = arith.constant 2.500000e-01 : f32
    %198 = vector.broadcast %cst_67 : f32 to vector<8x8xf32>
    %199 = arith.mulf %192, %198 : vector<8x8xf32>
    %200 = vector.broadcast %3 : vector<1x32xf32> to vector<8x32xf32>
    %201 = arith.addf %197, %200 : vector<8x32xf32>
    %c0_68 = arith.constant 0 : index
    %c1_69 = arith.constant 1 : index
    %c0_70 = arith.constant 0 : index
    %202 = vector.load %arg5[%c0_68, %c1_69, %c0_70] : memref<8x2x32xf32, #tpu.memory_space<vmem>>, vector<8x1x32xf32>
    %203 = vector.shape_cast %202 : vector<8x1x32xf32> to vector<8x32xf32>
    %204 = vector.shape_cast %201 : vector<8x32xf32> to vector<8x1x32xf32>
    tpu.vector_store %arg5[%c0_68, %c1_69, %c0_70], %204 {strides = array<i32>} : memref<8x2x32xf32, #tpu.memory_space<vmem>>, vector<8x1x32xf32>,
    %c1_71 = arith.constant 1 : index
    %c0_72 = arith.constant 0 : index
    %c0_73 = arith.constant 0 : index
    %205 = vector.load %arg6[%c1_71, %c0_72, %c0_73] : memref<2x8x8xf32, #tpu.memory_space<vmem>>, vector<1x8x8xf32>
    %206 = vector.shape_cast %205 : vector<1x8x8xf32> to vector<8x8xf32>
    %207 = vector.shape_cast %199 : vector<8x8xf32> to vector<1x8x8xf32>
    tpu.vector_store %arg6[%c1_71, %c0_72, %c0_73], %207 {strides = array<i32>} : memref<2x8x8xf32, #tpu.memory_space<vmem>>, vector<1x8x8xf32>,
    return
  }
}

</mosaic_0001>

<bundles_post_ra>
// kernel: tpu_custom_call.1
= control target key start
LH: loop header
LB: loop body
LE: loop exit
PB: predicated region body
PF: predicated region fallthrough
CT: control target
= control target key end

     0   :  { %12 = vsyncpa [#allocation3], 0  ;;  %vm85_vm0 = vcmask 261120   ;;  %v2797_v1 = vmov 0.0   ;;  %vm2798_vm1 = vmmov 0   ;;  %s3294_s0 = inlined_call_operand.vmem [shape: f32[8,2,32], index: 0, kind: input, shape index: {}]   ;;  %s3295_s1 = inlined_call_operand.vmem [shape: f32[96,32], index: 1, kind: input, shape index: {}]   ;;  %s3296_s2 = inlined_call_operand.vmem [shape: f32[1,96], index: 2, kind: input, shape index: {}]   ;;  %s3297_s3 = inlined_call_operand.vmem [shape: f32[4,8,32], index: 3, kind: input, shape index: {}]   ;;  %s3298_s4 = inlined_call_operand.vmem [shape: f32[1,32], index: 4, kind: input, shape index: {}]   ;;  %s3299_s5 = inlined_call_operand.hbm [shape: f32[8,2,32], index: 5, kind: output, shape index: {0}]   ;;  %s3300_s6 = inlined_call_operand.hbm [shape: f32[2,8,8], index: 6, kind: output, shape index: {1}]  }
   0x1   :  { %v2855_v0 = vld [vmem:[%s3295_s1 + $0x58] sm:$0xff]  ;;  %2527 = vmatprep.subr.mxu0 %v2797_v1  ;;  %2551 = vmatprep.mubr.msk.f32.mxu0 %vm2798_vm1, %v2797_v1  ;;  %v2867_v2 = vld [vmem:[%s3295_s1 + $0x50] sm:$0xff]  ;;  %v2877_v3 = vld [vmem:[%s3295_s1 + $0x48] sm:$0xff] }
   0x2   :  { %2528 = vmatpush3.xpose.msk.msra.mxu0 %vm85_vm0, %v2855_v0  ;;  %2554 = vmatprep.subr.mxu1 %v2797_v1 }
   0x3   :  { %2529 = vmatprep.subr.mxu0 %v2797_v1  ;;  %2556 = vmatprep.mubr.msk.f32.mxu1 %vm2798_vm1, %v2797_v1 }
   0x6   :  { %2530 = vmatpush3.xpose.msk.msra.mxu0 %vm85_vm0, %v2867_v2 }
   0x7   :  { %2531 = vmatprep.subr.mxu0 %v2797_v1 }
   0x8   :  { %13 = vsyncpa [#allocation5], 0  ;;  %v2885_v4 = vld [vmem:[%s3295_s1 + $0x40] sm:$0xff]  ;;  %v2893_v5 = vld [vmem:[%s3295_s1 + $0x38] sm:$0xff]  ;;  %vm65_vm2 = vcmask 1041409   ;;  %vm68_vm3 = vcmask 1042434  }
   0x9   :  { %v30_v6 = vld [vmem:[%s3295_s1 + $0x30] sm:$0xff]  ;;  %v43_v7 = vld [vmem:[%s3294_s0 + $0x2] sm:$0x1]  ;;  %v29_v8 = vld [vmem:[%s3295_s1 + $0x28] sm:$0xff]  ;;  %vm71_vm4 = vcmask 1043459   ;;  %vm74_vm5 = vcmask 1044484  }
   0xa   :  { %2532 = vmatpush3.xpose.msk.msra.mxu0 %vm85_vm0, %v2877_v3  ;;  %v44_v9 = vld [vmem:[%s3294_s0 + $0x4] sm:$0x1]  ;;  %v64_v10 = vrot.slane %v43_v7, 7  ;;  %v42_v11 = vld [vmem:[%s3294_s0] sm:$0x1]  ;;  %v27_v18 = vld [vmem:[%s3295_s1 + $0x18] sm:$0xff] }
   0xb   :  { %2533 = vmatprep.subr.mxu0 %v2797_v1  ;;  %v28_v12 = vld [vmem:[%s3295_s1 + $0x20] sm:$0xff]  ;;  %v67_v14 = vrot.slane %v44_v9, 6  ;;  %v46_v16 = vld [vmem:[%s3294_s0 + $0x8] sm:$0x1]  ;;  %v47_v20 = vld [vmem:[%s3294_s0 + $0xa] sm:$0x1] }
   0xc   :  { %v45_v13 = vld [vmem:[%s3294_s0 + $0x6] sm:$0x1]  ;;  %v66_v15 = vsel %vm65_vm2, %v64_v10, %v42_v11  ;;  %v73_v21 = vrot.slane %v46_v16, 4  ;;  %v26_v23 = vld [vmem:[%s3295_s1 + $0x10] sm:$0xff]  ;;  %v48_v24 = vld [vmem:[%s3294_s0 + $0xc] sm:$0x1] }
   0xd   :  { %v70_v17 = vrot.slane %v45_v13, 5  ;;  %v69_v19 = vsel %vm68_vm3, %v67_v14, %v66_v15  ;;  %v76_v25 = vrot.slane %v47_v20, 3  ;;  %vm77_vm6 = vcmask 1045509   ;;  %v25_v27 = vld [vmem:[%s3295_s1 + $0x8] sm:$0xff]  ;;  %v24_v32 = vld [vmem:[%s3295_s1] sm:$0xff]  ;;  %s2799_s14 = smov 64  }
   0xe   :  { %2534 = vmatpush3.xpose.msk.msra.mxu0 %vm85_vm0, %v2885_v4  ;;  %v49_v28 = vld [vmem:[%s3294_s0 + $0xe] sm:$0x1]  ;;  %v79_v29 = vrot.slane %v48_v24, 2  ;;  %vm80_vm7 = vcmask 1046534   ;;  %vm83_vm8 = vcmask 1047559   ;;  %s2800_s15 = smov 96  }
   0xf   :  { %2535 = vmatprep.subr.mxu0 %v2797_v1  ;;  %v72_v22 = vsel %vm71_vm4, %v70_v17, %v69_v19  ;;  %v82_v31 = vrot.slane %v49_v28, 1  ;;  %v2998_v35 = vld [vmem:[%s3296_s2] ss:$0 sm:$0xff]  ;;  %s2801_s16 = smov 88   ;;  %vm198_vm9 = vcmask 64512   ;;  %s2802_s2 = smov 120  }
  0x10   :  { %v75_v26 = vsel %vm74_vm5, %v73_v21, %v72_v22  ;;  %s2803_s17 = smov 56   ;;  %s2804_s18 = smov 80   ;;  %v3056_v7 = vld [vmem:[%s3297_s3] sm:$0xff]  ;;  %vm1220_vm10 = vcmask 253952  }
  0x11   :  { %v78_v30 = vsel %vm77_vm6, %v76_v25, %v75_v26  ;;  %s2805_s19 = smov 112   ;;  %s2806_s24 = smov 48  }
  0x12   :  { %2536 = vmatpush3.xpose.msk.msra.mxu0 %vm85_vm0, %v2893_v5  ;;  %v81_v33 = vsel %vm80_vm7, %v79_v29, %v78_v30  ;;  %s2807_s25 = smov 72   ;;  %s2808_s26 = smov 104   ;;  %v3084_v30 = vld [vmem:[%s3297_s3 + $0x10] sm:$0xff] }
  0x13   :  { %2537 = vmatprep.subr.mxu0 %v2797_v1  ;;  %v84_v34 = vsel %vm83_vm8, %v82_v31, %v81_v33 }
  0x16   :  { %2538 = vmatpush3.xpose.msk.msra.mxu0 %vm85_vm0, %v30_v6 }
  0x17   :  { %2539 = vmatprep.subr.mxu0 %v2797_v1 }
  0x1a   :  { %2540 = vmatpush3.xpose.msk.msra.mxu0 %vm85_vm0, %v29_v8 }
  0x1b   :  { %2541 = vmatprep.subr.mxu0 %v2797_v1 }
  0x1e   :  { %2542 = vmatpush3.xpose.msk.msra.mxu0 %vm85_vm0, %v28_v12 }
  0x1f   :  { %2543 = vmatprep.subr.mxu0 %v2797_v1 }
  0x22   :  { %2544 = vmatpush3.xpose.msk.msra.mxu0 %vm85_vm0, %v27_v18 }
  0x23   :  { %2545 = vmatprep.subr.mxu0 %v2797_v1 }
  0x26   :  { %2546 = vmatpush3.xpose.msk.msra.mxu0 %vm85_vm0, %v26_v23 }
  0x27   :  { %2547 = vmatprep.subr.mxu0 %v2797_v1 }
  0x2a   :  { %2548 = vmatpush3.xpose.msk.msra.mxu0 %vm85_vm0, %v25_v27 }
  0x2b   :  { %2549 = vmatprep.subr.mxu0 %v2797_v1 }
  0x2e   :  { %2550 = vmatpush3.xpose.msk.msra.mxu0 %vm85_vm0, %v24_v32 }
  0x2f   :  { %2614 = vmatprep.subr.mxu0 %v2797_v1 }
  0x31   :  { %2552 = vmatmul.mubr.msk.f32.vlgmr.msra.gmra.mxu0 %vm85_vm0, %v84_v34 }
  0x32   :  { %2615 = vmatpush3.xpose.msk.msra.mxu0 %vm85_vm0, %v2855_v0  ;;  %2638 = vmatprep.mubr.msk.f32.mxu0 %vm2798_vm1, %v2797_v1 }
  0x33   :  { %2616 = vmatprep.subr.mxu0 %v2797_v1 }
  0x36   :  { %2617 = vmatpush3.xpose.msk.msra.mxu0 %vm85_vm0, %v2867_v2 }
  0x37   :  { %2618 = vmatprep.subr.mxu0 %v2797_v1 }
  0x3a   :  { %2619 = vmatpush3.xpose.msk.msra.mxu0 %vm85_vm0, %v2877_v3 }
  0x3b   :  { %2620 = vmatprep.subr.mxu0 %v2797_v1 }
  0x3e   :  { %2621 = vmatpush3.xpose.msk.msra.mxu0 %vm85_vm0, %v2885_v4 }
  0x3f   :  { %2622 = vmatprep.subr.mxu0 %v2797_v1 }
  0x42   :  { %2623 = vmatpush3.xpose.msk.msra.mxu0 %vm85_vm0, %v2893_v5 }
  0x43   :  { %2624 = vmatprep.subr.mxu0 %v2797_v1 }
  0x46   :  { %2625 = vmatpush3.xpose.msk.msra.mxu0 %vm85_vm0, %v30_v6  ;;  %v3046_v6 = vld [vmem:[%s3297_s3 + $0x8] sm:$0xff] }
  0x47   :  { %2626 = vmatprep.subr.mxu0 %v2797_v1 }
  0x4a   :  { %2627 = vmatpush3.xpose.msk.msra.mxu0 %vm85_vm0, %v29_v8 }
  0x4b   :  { %2628 = vmatprep.subr.mxu0 %v2797_v1 }
  0x4e   :  { %2629 = vmatpush3.xpose.msk.msra.mxu0 %vm85_vm0, %v28_v12 }
  0x4f   :  { %2630 = vmatprep.subr.mxu0 %v2797_v1 }
  0x52   :  { %2631 = vmatpush3.xpose.msk.msra.mxu0 %vm85_vm0, %v27_v18 }
  0x53   :  { %2632 = vmatprep.subr.mxu0 %v2797_v1 }
  0x56   :  { %2633 = vmatpush3.xpose.msk.msra.mxu0 %vm85_vm0, %v26_v23 }
  0x57   :  { %2634 = vmatprep.subr.mxu0 %v2797_v1 }
  0x5a   :  { %2635 = vmatpush3.xpose.msk.msra.mxu0 %vm85_vm0, %v25_v27 }
  0x5b   :  { %2636 = vmatprep.subr.mxu0 %v2797_v1 }
  0x5e   :  { %2637 = vmatpush3.xpose.msk.msra.mxu0 %vm85_vm0, %v24_v32 }
  0xf1   :  { %v190_v36 = vpop.f32.mrf.mxu0 }
  0xf2   :  { %v3001_v37 = vadd.f32 %v2998_v35, %v190_v36 }
  0xf3   :  { %v2553_v38 = vpop.f32.mrf.mxu0 }
  0xf4   :  { %286 = vrot.lane.b32.xlu1 %v3001_v37, %s2799_s14  ;;  %196 = vrot.lane.b32.xlu0 %v3001_v37, %s2800_s15  ;;  %v3011_v40 = vmul.f32 0.125, %v3001_v37 }
  0xf8   :  { %364 = vrot.lane.b32.xlu1 %v3001_v37, %s2801_s16 }
 0x166   :  { %v197_v39 = vpop.permute.xlu0 %196  ;;  %v287_v41 = vpop.permute.xlu1 %286 }
 0x167   :  { %2555 = vmatpush3.xpose.msk.msra.mxu1 %vm198_vm9, %v197_v39 }
 0x168   :  { %2559 = vmatprep.subr.mxu1 %v2797_v1 }
 0x16a   :  { %2557 = vmatmul.mubr.msk.f32.vlgmr.msra.gmra.mxu1 %vm198_vm9, %v3011_v40  ;;  %v365_v50 = vpop.permute.xlu1 %364 }
 0x16b   :  { %2560 = vmatpush3.msra.mxu1 %v287_v41  ;;  %2561 = vmatprep.mubr.msk.f32.mxu1 %vm2798_vm1, %v2797_v1 }
 0x16c   :  { %2564 = vmatprep.subr.mxu1 %v2797_v1 }
 0x22a   :  { %v270_v42 = vpop.f32.mrf.mxu1 }
 0x22b   :  { %v274_v43 = vsel %vm198_vm9, %v270_v42, -inf }
 0x22c   :  { %275 = vmax.xlane.f32.xlu0 %v274_v43  ;;  %v2558_v44 = vpop.f32.mrf.mxu1 }
 0x22d   :  { %v1230_v44 = vld [vmem:[%s3294_s0 + $0x1] sm:$0x1] }
 0x2b5   :  { %v276_v45 = vpop.xlane.xlu0 %275 }
 0x2b6   :  { %v277_v46 = vsub.f32 %v270_v42, %v276_v45  ;;  %v1231_v45 = vld [vmem:[%s3294_s0 + $0x3] sm:$0x1] }
 0x2b8   :  { %v278_v47 = vmul.f32 1.442695, %v277_v46  ;;  %v1232_v46 = vld [vmem:[%s3294_s0 + $0x5] sm:$0x1] }
 0x2ba   :  { %2721 = vpow2.f32 %v278_v47  ;;  %v1233_v47 = vld [vmem:[%s3294_s0 + $0x7] sm:$0x1] }
 0x2c7   :  { %v2722_v48 = vpop.eup %2721 }
 0x2c8   :  { %v280_v49 = vsel %vm198_vm9, %v2722_v48, 0.0 }
 0x2c9   :  { %281 = vadd.xlane.f32.xlu1 %v280_v49  ;;  %v1235_v49 = vld [vmem:[%s3294_s0 + $0xb] sm:$0x1] }
 0x2da   :  { %362 = vrot.lane.b32.xlu1 %v3011_v40, %s2802_s2 }
 0x352   :  { %v282_v51 = vpop.xlane.xlu1 %281 }
 0x353   :  { %2723 = vrcp.f32 %v282_v51  ;;  %v1246_v51 = vrot.slane %v1231_v45, 7 }
 0x356   :  { %v363_v54 = vpop.permute.xlu1 %362 }
 0x360   :  { %v2724_v52 = vpop.eup %2723 }
 0x361   :  { %v3023_v53 = vmul.f32 %v2724_v52, %v2722_v48  ;;  %v1234_v48 = vld [vmem:[%s3294_s0 + $0x9] sm:$0x1]  ;;  %v1248_v52 = vrot.slane %v1232_v46, 6 }
 0x363   :  { %2562 = vmatmul.mubr.msk.f32.vlgmr.msra.gmra.mxu1 %vm198_vm9, %v3023_v53 }
 0x364   :  { %2565 = vmatpush3.xpose.msk.msra.mxu1 %vm198_vm9, %v365_v50  ;;  %2566 = vmatprep.mubr.msk.f32.mxu1 %vm2798_vm1, %v2797_v1  ;;  %v1236_v50 = vld [vmem:[%s3294_s0 + $0xd] sm:$0x1] }
 0x365   :  { %2569 = vmatprep.subr.mxu1 %v2797_v1 }
 0x367   :  { %2567 = vmatmul.mubr.msk.f32.vlgmr.msra.gmra.mxu1 %vm198_vm9, %v363_v54  ;;  %v1250_v54 = vrot.slane %v1233_v47, 5 }
 0x368   :  { %2571 = vmatprep.mubr.msk.f32.mxu1 %vm2798_vm1, %v2797_v1 }
 0x423   :  { %v358_v55 = vpop.f32.mrf.mxu1 }
 0x425   :  { %v2563_v56 = vpop.f32.mrf.mxu1 }
 0x426   :  { %v1247_v56 = vsel %vm65_vm2, %v1246_v51, %v1230_v44 }
 0x427   :  { %v436_v57 = vpop.f32.mrf.mxu1 }
 0x428   :  { %v440_v58 = vsel %vm198_vm9, %v436_v57, -inf }
 0x429   :  { %441 = vmax.xlane.f32.xlu1 %v440_v58  ;;  %v2568_v59 = vpop.f32.mrf.mxu1  ;;  %v1249_v58 = vsel %vm68_vm3, %v1248_v52, %v1247_v56 }
 0x42a   :  { %v1256_v59 = vrot.slane %v1236_v50, 2 }
 0x4b2   :  { %v442_v60 = vpop.xlane.xlu1 %441 }
 0x4b3   :  { %v443_v61 = vsub.f32 %v436_v57, %v442_v60  ;;  %v1254_v57 = vrot.slane %v1235_v49, 3  ;;  %v1251_v60 = vsel %vm71_vm4, %v1250_v54, %v1249_v58 }
 0x4b5   :  { %v444_v62 = vmul.f32 1.442695, %v443_v61 }
 0x4b7   :  { %2725 = vpow2.f32 %v444_v62 }
 0x4c4   :  { %v2726_v63 = vpop.eup %2725 }
 0x4c5   :  { %v446_v0 = vsel %vm198_vm9, %v2726_v63, 0.0 }
 0x4c6   :  { %447 = vadd.xlane.f32.xlu0 %v446_v0 }
 0x4dc   :  { %452 = vrot.lane.b32.xlu0 %v3001_v37, %s2803_s17 }
 0x4e0   :  { %676 = vrot.lane.b32.xlu0 %v3001_v37, %s2804_s18 }
 0x4e4   :  { %674 = vrot.lane.b32.xlu0 %v3011_v40, %s2805_s19 }
 0x54f   :  { %v448_v2 = vpop.xlane.xlu0 %447 }
 0x550   :  { %2727 = vrcp.f32 %v448_v2 }
 0x553   :  { %v453_v3 = vpop.permute.xlu0 %452 }
 0x554   :  { %2570 = vmatpush3.msra.mxu1 %v453_v3 }
 0x555   :  { %2574 = vmatprep.subr.mxu1 %v2797_v1 }
 0x557   :  { %v677_v9 = vpop.permute.xlu0 %676 }
 0x55b   :  { %v675_v11 = vpop.permute.xlu0 %674 }
 0x55d   :  { %v2728_v4 = vpop.eup %2727 }
 0x55e   :  { %v450_v5 = vmul.f32 %v2728_v4, %v2726_v63 }
 0x560   :  { %2572 = vmatmul.mubr.msk.f32.vlgmr.msra.gmra.mxu1 %vm198_vm9, %v450_v5  ;;  %v451_v28 = vadd.f32 %v450_v5, %v3023_v53  ;;  %v1237_v53 = vld [vmem:[%s3294_s0 + $0xf] sm:$0x1]  ;;  %s2809_s0 = smov 40  }
 0x561   :  { %2575 = vmatpush3.msra.mxu1 %v3046_v6  ;;  %2576 = vmatprep.mubr.msk.f32.mxu1 %vm2798_vm1, %v2797_v1  ;;  %v1258_v61 = vrot.slane %v1237_v53, 1 }
 0x562   :  { %2579 = vmatprep.subr.mxu1 %v2797_v1 }
 0x620   :  { %v524_v8 = vpop.f32.mrf.mxu1 }
 0x621   :  { %2577 = vmatmul.mubr.msk.f32.vlgmr.msra.gmra.mxu1 %vm198_vm9, %v524_v8 }
 0x622   :  { %2580 = vmatpush3.msra.mxu1 %v3056_v7  ;;  %v2573_v10 = vpop.f32.mrf.mxu1  ;;  %2581 = vmatprep.mubr.msk.f32.mxu1 %vm2798_vm1, %v2797_v1 }
 0x623   :  { %2584 = vmatprep.subr.mxu1 %v2797_v1 }
 0x625   :  { %2582 = vmatmul.mubr.msk.f32.vlgmr.msra.gmra.mxu1 %vm198_vm9, %v358_v55  ;;  %v1252_v55 = vrot.slane %v1234_v48, 4 }
 0x626   :  { %2585 = vmatpush3.xpose.msk.msra.mxu1 %vm198_vm9, %v677_v9  ;;  %2586 = vmatprep.mubr.msk.f32.mxu1 %vm2798_vm1, %v2797_v1 }
 0x627   :  { %2589 = vmatprep.subr.mxu1 %v2797_v1  ;;  %v1253_v62 = vsel %vm74_vm5, %v1252_v55, %v1251_v60 }
 0x628   :  { %v1255_v63 = vsel %vm77_vm6, %v1254_v57, %v1253_v62 }
 0x629   :  { %2587 = vmatmul.mubr.msk.f32.vlgmr.msra.gmra.mxu1 %vm198_vm9, %v675_v11  ;;  %v1257_v0 = vsel %vm80_vm7, %v1256_v59, %v1255_v63 }
 0x62a   :  { %2591 = vmatprep.mubr.msk.f32.mxu1 %vm2798_vm1, %v2797_v1  ;;  %v1259_v2 = vsel %vm83_vm8, %v1258_v61, %v1257_v0 }
 0x62b   :  { %2639 = vmatmul.mubr.msk.f32.vlgmr.msra.gmra.mxu0 %vm85_vm0, %v1259_v2 }
 0x6e1   :  { %v597_v12 = vpop.f32.mrf.mxu1 }
 0x6e3   :  { %v2578_v13 = vpop.f32.mrf.mxu1 }
 0x6e5   :  { %v670_v14 = vpop.f32.mrf.mxu1 }
 0x6e6   :  { %v671_v15 = vadd.f32 %v670_v14, %v597_v12 }
 0x6e7   :  { %v2583_v16 = vpop.f32.mrf.mxu1 }
 0x6e9   :  { %v748_v17 = vpop.f32.mrf.mxu1 }
 0x6ea   :  { %v752_v18 = vsel %vm198_vm9, %v748_v17, -inf }
 0x6eb   :  { %753 = vmax.xlane.f32.xlu1 %v752_v18  ;;  %v2588_v19 = vpop.f32.mrf.mxu1  ;;  %v1328_v10 = vpop.f32.mrf.mxu0 }
 0x6ec   :  { %v3140_v11 = vadd.f32 %v2998_v35, %v1328_v10  ;;  %v3152_v35 = vld [vmem:[%s3297_s3 + $0x18] sm:$0xff] }
 0x6ed   :  { %v2640_v12 = vpop.f32.mrf.mxu0 }
 0x6fc   :  { %764 = vrot.lane.b32.xlu1 %v3001_v37, %s2806_s24 }
 0x700   :  { %916 = vrot.lane.b32.xlu1 %v3001_v37, %s2807_s25 }
 0x704   :  { %914 = vrot.lane.b32.xlu1 %v3011_v40, %s2808_s26 }
 0x774   :  { %v754_v20 = vpop.xlane.xlu1 %753 }
 0x775   :  { %v755_v21 = vsub.f32 %v748_v17, %v754_v20 }
 0x777   :  { %v756_v22 = vmul.f32 1.442695, %v755_v21  ;;  %v3167_v21 = vmul.f32 0.125, %v3140_v11 }
 0x778   :  { %v765_v23 = vpop.permute.xlu1 %764 }
 0x779   :  { %2729 = vpow2.f32 %v756_v22  ;;  %2590 = vmatpush3.msra.mxu1 %v765_v23  ;;  %v2810_v23 = vmov 1966171168  }
 0x77a   :  { %2594 = vmatprep.subr.mxu1 %v2797_v1 }
 0x77c   :  { %v917_v32 = vpop.permute.xlu1 %916 }
 0x780   :  { %v915_v36 = vpop.permute.xlu1 %914 }
 0x786   :  { %v2730_v24 = vpop.eup %2729 }
 0x787   :  { %v758_v25 = vsel %vm198_vm9, %v2730_v24, 0.0 }
 0x788   :  { %759 = vadd.xlane.f32.xlu0 %v758_v25  ;;  %v1167_v25 = vlaneseq }
 0x811   :  { %v760_v26 = vpop.xlane.xlu0 %759 }
 0x812   :  { %2731 = vrcp.f32 %v760_v26 }
 0x81f   :  { %v2732_v27 = vpop.eup %2731 }
 0x820   :  { %v762_v29 = vmul.f32 %v2732_v27, %v2730_v24  ;;  %v1165_v24 = vunpack.c.l.s4 %v2810_v23  ;;  %v1168_v27 = vshrl.u32 %v1167_v25, 7 }
 0x822   :  { %2592 = vmatmul.mubr.msk.f32.vlgmr.msra.gmra.mxu1 %vm198_vm9, %v762_v29  ;;  %v3087_v31 = vadd.f32 %v762_v29, %v451_v28  ;;  %v1166_v26 = vunpack.c.0.s8 %v1165_v24  ;;  %v3177_v28 = vld [vmem:[%s3298_s4] ss:$0 sm:$0xff]  ;;  %s2811_s4 = smov [#allocation4]  }
 0x823   :  { %2595 = vmatpush3.msra.mxu1 %v3084_v30  ;;  %2596 = vmatprep.mubr.msk.f32.mxu1 %vm2798_vm1, %v2797_v1 }
 0x824   :  { %2599 = vmatprep.subr.mxu1 %v2797_v1 }
 0x8e2   :  { %v836_v33 = vpop.f32.mrf.mxu1 }
 0x8e3   :  { %2597 = vmatmul.mubr.msk.f32.vlgmr.msra.gmra.mxu1 %vm198_vm9, %v836_v33 }
 0x8e4   :  { %2600 = vmatpush3.xpose.msk.msra.mxu1 %vm198_vm9, %v917_v32  ;;  %v2593_v34 = vpop.f32.mrf.mxu1  ;;  %2601 = vmatprep.mubr.msk.f32.mxu1 %vm2798_vm1, %v2797_v1  ;;  %v3180_v32 = vsub.s32 %v1166_v26, %v1168_v27 }
 0x8e5   :  { %2604 = vmatprep.subr.mxu1 %v2797_v1 }
 0x8e7   :  { %2602 = vmatmul.mubr.msk.f32.vlgmr.msra.gmra.mxu1 %vm198_vm9, %v915_v36 }
 0x8e8   :  { %2606 = vmatprep.mubr.msk.f32.mxu1 %vm2798_vm1, %v2797_v1 }
 0x9a3   :  { %v909_v38 = vpop.f32.mrf.mxu1 }
 0x9a4   :  { %v3101_v39 = vadd.f32 %v909_v38, %v671_v15 }
 0x9a5   :  { %v2598_v40 = vpop.f32.mrf.mxu1 }
 0x9a7   :  { %v988_v41 = vpop.f32.mrf.mxu1 }
 0x9a8   :  { %v992_v42 = vsel %vm198_vm9, %v988_v41, -inf }
 0x9a9   :  { %993 = vmax.xlane.f32.xlu1 %v992_v42  ;;  %v2603_v43 = vpop.f32.mrf.mxu1 }
 0x9ba   :  { %1423 = vrot.lane.b32.xlu1 %v3140_v11, %s2799_s14 }
 0x9be   :  { %1501 = vrot.lane.b32.xlu1 %v3140_v11, %s2801_s16 }
 0xa32   :  { %v994_v3 = vpop.xlane.xlu1 %993 }
 0xa33   :  { %v995_v4 = vsub.f32 %v988_v41, %v994_v3 }
 0xa35   :  { %v996_v5 = vmul.f32 1.442695, %v995_v4 }
 0xa36   :  { %v1424_v22 = vpop.permute.xlu1 %1423 }
 0xa37   :  { %2733 = vpow2.f32 %v996_v5 }
 0xa3a   :  { %v1502_v58 = vpop.permute.xlu1 %1501 }
 0xa44   :  { %v2734_v8 = vpop.eup %2733 }
 0xa45   :  { %v998_v9 = vsel %vm198_vm9, %v2734_v8, 0.0 }
 0xa46   :  { %999 = vadd.xlane.f32.xlu0 %v998_v9 }
 0xa5c   :  { %1004 = vrot.lane.b32.xlu0 %v3001_v37, %s2809_s0 }
 0xa60   :  { %1334 = vrot.lane.b32.xlu0 %v3140_v11, %s2800_s15  ;;  %s2378_s15 = sshll.u32 %s2811_s4, 4  ;;  %s2379_s15 = int_to_ptr.vmem [resolvable:$true] %s2378_s15 }
 0xa61   :  { %s2753_s16 = scalar_lea.vmem %s2379_s15, 256  ;;  %p2758_p1 = scmp.lt.s32.totalorder %s2379_s15, %s2379_s15 }
 0xa62   :  { %p2754_p0 = scmp.ne.s32.totalorder %s2379_s15, %s2753_s16  ;;  %p2759_p2 = scmp.lt.s32.totalorder %s2753_s16, %s2753_s16 }
 0xa64   :  { %p2760_p3 = por %p2759_p2, %p2758_p1 }
 0xa66   :  { %p2761_p4 = pnand %p2760_p3, %p2754_p0 }
 0xacf   :  { %v1000_v13 = vpop.xlane.xlu0 %999 }
 0xad0   :  { %2735 = vrcp.f32 %v1000_v13 }
 0xad3   :  { %v1005_v14 = vpop.permute.xlu0 %1004 }
 0xad4   :  { %2605 = vmatpush3.msra.mxu1 %v1005_v14 }
 0xad5   :  { %2609 = vmatprep.subr.mxu1 %v2797_v1 }
 0xad7   :  { %v1335_v18 = vpop.permute.xlu0 %1334 }
 0xadd   :  { %v2736_v37 = vpop.eup %2735 }
 0xade   :  { %v1002_v15 = vmul.f32 %v2736_v37, %v2734_v8 }
 0xae0   :  { %2607 = vmatmul.mubr.msk.f32.vlgmr.msra.gmra.mxu1 %vm198_vm9, %v1002_v15  ;;  %v1003_v16 = vadd.f32 %v1002_v15, %v3087_v31 }
 0xae1   :  { %2610 = vmatpush3.msra.mxu1 %v3152_v35  ;;  %2611 = vmatprep.mubr.msk.f32.mxu1 %vm2798_vm1, %v2797_v1 }
 0xae2   :  { %2641 = vmatprep.subr.mxu1 %v2797_v1  ;;  %v1154_v17 = vmul.f32 0.25, %v1003_v16 }
 0xae4   :  { %1229 = vst.msk [vmem:[#allocation4] sm:$0xff] %vm198_vm9, %v1154_v17 }
 0xba0   :  { %v1076_v19 = vpop.f32.mrf.mxu1 }
 0xba1   :  { %2612 = vmatmul.mubr.msk.f32.vlgmr.msra.gmra.mxu1 %vm198_vm9, %v1076_v19 }
 0xba2   :  { %2642 = vmatpush3.xpose.msk.msra.mxu1 %vm198_vm9, %v1335_v18  ;;  %v2608_v20 = vpop.f32.mrf.mxu1  ;;  %2643 = vmatprep.mubr.msk.f32.mxu1 %vm2798_vm1, %v2797_v1 }
 0xba3   :  { %2646 = vmatprep.subr.mxu1 %v2797_v1 }
 0xba5   :  { %2644 = vmatmul.mubr.msk.f32.vlgmr.msra.gmra.mxu1 %vm198_vm9, %v3167_v21 }
 0xba6   :  { %2647 = vmatpush3.msra.mxu1 %v1424_v22  ;;  %2648 = vmatprep.mubr.msk.f32.mxu1 %vm2798_vm1, %v2797_v1 }
 0xba7   :  { %2651 = vmatprep.subr.mxu1 %v2797_v1 }
 0xc61   :  { %v1149_v29 = vpop.f32.mrf.mxu1 }
 0xc62   :  { %v1153_v31 = vadd.f32 %v1149_v29, %v3101_v39 }
 0xc63   :  { %v2613_v33 = vpop.f32.mrf.mxu1 }
 0xc64   :  { %v1161_v34 = vadd.f32 %v3177_v28, %v1153_v31 }
 0xc65   :  { %v1407_v36 = vpop.f32.mrf.mxu1 }
 0xc66   :  { %v1163_v38 = vcombine.high %v1161_v34, %v1161_v34  ;;  %v1170_v40 = vrot.slane %v1161_v34, %v3180_v32  ;;  %v1411_v41 = vsel %vm198_vm9, %v1407_v36, -inf }
 0xc67   :  { %1412 = vmax.xlane.f32.xlu0 %v1411_v41  ;;  %v2645_v42 = vpop.f32.mrf.mxu1 }
 0xc68   :  { %v1177_v43 = vrot.slane %v1163_v38, %v3180_v32  ;;  %v1178_v44 = vcombine.high %v1170_v40, %v1170_v40  ;;  %v1186_v45 = vrot.slane %v1170_v40, %v3180_v32 }
 0xc6a   :  { %v1179_v39 = vcombine.high %v1177_v43, %v1177_v43  ;;  %v1193_v46 = vrot.slane %v1177_v43, %v3180_v32  ;;  %v1200_v47 = vrot.slane %v1178_v44, %v3180_v32  ;;  %v1208_v48 = vcombine.high %v1186_v45, %v1186_v45  ;;  %1221 = vst.msk [vmem:[#allocation2] sm:$0x1] %vm1220_vm10, %v1186_v45 }
 0xc6c   :  { %v1207_v49 = vrot.slane %v1179_v39, %v3180_v32  ;;  %v1209_v50 = vcombine.high %v1193_v46, %v1193_v46  ;;  %v1210_v51 = vcombine.high %v1200_v47, %v1200_v47  ;;  %1222 = vst.msk [vmem:[#allocation2 + $0x2] sm:$0x1] %vm1220_vm10, %v1200_v47  ;;  %1223 = vst.msk [vmem:[#allocation2 + $0x4] sm:$0x1] %vm1220_vm10, %v1208_v48 }
 0xc6d   :  { %1225 = vst.msk [vmem:[#allocation2 + $0x8] sm:$0x1] %vm1220_vm10, %v1193_v46 }
 0xc6e   :  { %v1211_v52 = vcombine.high %v1207_v49, %v1207_v49  ;;  %1224 = vst.msk [vmem:[#allocation2 + $0x6] sm:$0x1] %vm1220_vm10, %v1210_v51  ;;  %1226 = vst.msk [vmem:[#allocation2 + $0xa] sm:$0x1] %vm1220_vm10, %v1207_v49 }
 0xc6f   :  { %1227 = vst.msk [vmem:[#allocation2 + $0xc] sm:$0x1] %vm1220_vm10, %v1209_v50 }
 0xc70   :  { %1228 = vst.msk [vmem:[#allocation2 + $0xe] sm:$0x1] %vm1220_vm10, %v1211_v52 }
 0xcf0   :  { %v1413_v53 = vpop.xlane.xlu0 %1412 }
 0xcf1   :  { %v1414_v54 = vsub.f32 %v1407_v36, %v1413_v53 }
 0xcf3   :  { %v1415_v55 = vmul.f32 1.442695, %v1414_v54 }
 0xcf5   :  { %2737 = vpow2.f32 %v1415_v55 }
 0xd02   :  { %v2738_v56 = vpop.eup %2737 }
 0xd03   :  { %v1417_v57 = vsel %vm198_vm9, %v2738_v56, 0.0 }
 0xd04   :  { %1418 = vadd.xlane.f32.xlu1 %v1417_v57 }
 0xd15   :  { %1499 = vrot.lane.b32.xlu1 %v3167_v21, %s2802_s2 }
 0xd8d   :  { %v1419_v59 = vpop.xlane.xlu1 %1418 }
 0xd8e   :  { %2739 = vrcp.f32 %v1419_v59 }
 0xd91   :  { %v1500_v62 = vpop.permute.xlu1 %1499 }
 0xd9b   :  { %v2740_v60 = vpop.eup %2739 }
 0xd9c   :  { %v3201_v61 = vmul.f32 %v2740_v60, %v2738_v56 }
 0xd9e   :  { %2649 = vmatmul.mubr.msk.f32.vlgmr.msra.gmra.mxu1 %vm198_vm9, %v3201_v61 }
 0xd9f   :  { %2652 = vmatpush3.xpose.msk.msra.mxu1 %vm198_vm9, %v1502_v58  ;;  %2653 = vmatprep.mubr.msk.f32.mxu1 %vm2798_vm1, %v2797_v1 }
 0xda0   :  { %2656 = vmatprep.subr.mxu1 %v2797_v1 }
 0xda2   :  { %2654 = vmatmul.mubr.msk.f32.vlgmr.msra.gmra.mxu1 %vm198_vm9, %v1500_v62 }
 0xda3   :  { %2658 = vmatprep.mubr.msk.f32.mxu1 %vm2798_vm1, %v2797_v1 }
 0xe5e   :  { %v1495_v63 = vpop.f32.mrf.mxu1 }
 0xe60   :  { %v2650_v0 = vpop.f32.mrf.mxu1 }
 0xe62   :  { %v1573_v2 = vpop.f32.mrf.mxu1 }
 0xe63   :  { %v1577_v3 = vsel %vm198_vm9, %v1573_v2, -inf }
 0xe64   :  { %1578 = vmax.xlane.f32.xlu1 %v1577_v3  ;;  %v2655_v4 = vpop.f32.mrf.mxu1 }
 0xeed   :  { %v1579_v5 = vpop.xlane.xlu1 %1578 }
 0xeee   :  { %v1580_v8 = vsub.f32 %v1573_v2, %v1579_v5 }
 0xef0   :  { %v1581_v9 = vmul.f32 1.442695, %v1580_v8 }
 0xef2   :  { %2741 = vpow2.f32 %v1581_v9 }
 0xeff   :  { %v2742_v10 = vpop.eup %2741 }
 0xf00   :  { %v1583_v12 = vsel %vm198_vm9, %v2742_v10, 0.0 }
 0xf01   :  { %1584 = vadd.xlane.f32.xlu0 %v1583_v12 }
 0xf17   :  { %1589 = vrot.lane.b32.xlu0 %v3140_v11, %s2803_s17 }
 0xf1b   :  { %1813 = vrot.lane.b32.xlu0 %v3140_v11, %s2804_s18 }
 0xf1f   :  { %1811 = vrot.lane.b32.xlu0 %v3167_v21, %s2805_s19 }
 0xf8a   :  { %v1585_v13 = vpop.xlane.xlu0 %1584 }
 0xf8b   :  { %2743 = vrcp.f32 %v1585_v13 }
 0xf8e   :  { %v1590_v14 = vpop.permute.xlu0 %1589 }
 0xf8f   :  { %2657 = vmatpush3.msra.mxu1 %v1590_v14 }
 0xf90   :  { %2661 = vmatprep.subr.mxu1 %v2797_v1 }
 0xf92   :  { %v1814_v17 = vpop.permute.xlu0 %1813 }
 0xf98   :  { %v2744_v37 = vpop.eup %2743 }
 0xf99   :  { %v1587_v15 = vmul.f32 %v2744_v37, %v2742_v10 }
 0xf9b   :  { %2659 = vmatmul.mubr.msk.f32.vlgmr.msra.gmra.mxu1 %vm198_vm9, %v1587_v15  ;;  %v1588_v41 = vadd.f32 %v1587_v15, %v3201_v61 }
 0xf9c   :  { %2662 = vmatpush3.msra.mxu1 %v3046_v6  ;;  %2663 = vmatprep.mubr.msk.f32.mxu1 %vm2798_vm1, %v2797_v1  ;;  %v1812_v6 = vpop.permute.xlu0 %1811 }
 0xf9d   :  { %2666 = vmatprep.subr.mxu1 %v2797_v1 }
0x105b   :  { %v1661_v16 = vpop.f32.mrf.mxu1 }
0x105c   :  { %2664 = vmatmul.mubr.msk.f32.vlgmr.msra.gmra.mxu1 %vm198_vm9, %v1661_v16 }
0x105d   :  { %2667 = vmatpush3.msra.mxu1 %v3056_v7  ;;  %v2660_v18 = vpop.f32.mrf.mxu1  ;;  %2668 = vmatprep.mubr.msk.f32.mxu1 %vm2798_vm1, %v2797_v1 }
0x105e   :  { %2671 = vmatprep.subr.mxu1 %v2797_v1 }
0x1060   :  { %2669 = vmatmul.mubr.msk.f32.vlgmr.msra.gmra.mxu1 %vm198_vm9, %v1495_v63 }
0x1061   :  { %2672 = vmatpush3.xpose.msk.msra.mxu1 %vm198_vm9, %v1814_v17  ;;  %2673 = vmatprep.mubr.msk.f32.mxu1 %vm2798_vm1, %v2797_v1 }
0x1062   :  { %2676 = vmatprep.subr.mxu1 %v2797_v1 }
0x1064   :  { %2674 = vmatmul.mubr.msk.f32.vlgmr.msra.gmra.mxu1 %vm198_vm9, %v1812_v6 }
0x1065   :  { %2678 = vmatprep.mubr.msk.f32.mxu1 %vm2798_vm1, %v2797_v1 }
0x111c   :  { %v1734_v7 = vpop.f32.mrf.mxu1 }
0x111e   :  { %v2665_v19 = vpop.f32.mrf.mxu1 }
0x1120   :  { %v1807_v20 = vpop.f32.mrf.mxu1 }
0x1121   :  { %v1808_v22 = vadd.f32 %v1807_v20, %v1734_v7 }
0x1122   :  { %v2670_v23 = vpop.f32.mrf.mxu1 }
0x1124   :  { %v1885_v24 = vpop.f32.mrf.mxu1 }
0x1125   :  { %v1889_v25 = vsel %vm198_vm9, %v1885_v24, -inf }
0x1126   :  { %1890 = vmax.xlane.f32.xlu0 %v1889_v25  ;;  %v2675_v26 = vpop.f32.mrf.mxu1 }
0x11af   :  { %v1891_v27 = vpop.xlane.xlu0 %1890 }
0x11b0   :  { %v1892_v29 = vsub.f32 %v1885_v24, %v1891_v27 }
0x11b2   :  { %v1893_v31 = vmul.f32 1.442695, %v1892_v29 }
0x11b4   :  { %2745 = vpow2.f32 %v1893_v31 }
0x11c1   :  { %v2746_v33 = vpop.eup %2745 }
0x11c2   :  { %v1895_v34 = vsel %vm198_vm9, %v2746_v33, 0.0 }
0x11c3   :  { %1896 = vadd.xlane.f32.xlu1 %v1895_v34 }
0x11d4   :  { %1901 = vrot.lane.b32.xlu1 %v3140_v11, %s2806_s24 }
0x11d8   :  { %2053 = vrot.lane.b32.xlu1 %v3140_v11, %s2807_s25 }
0x11dc   :  { %2051 = vrot.lane.b32.xlu1 %v3167_v21, %s2808_s26 }
0x124c   :  { %v1897_v36 = vpop.xlane.xlu1 %1896 }
0x124d   :  { %2747 = vrcp.f32 %v1897_v36 }
0x1250   :  { %v1902_v38 = vpop.permute.xlu1 %1901 }
0x1251   :  { %2677 = vmatpush3.msra.mxu1 %v1902_v38 }
0x1252   :  { %2681 = vmatprep.subr.mxu1 %v2797_v1 }
0x1254   :  { %v2054_v21 = vpop.permute.xlu1 %2053 }
0x1258   :  { %v2052_v39 = vpop.permute.xlu1 %2051 }
0x125a   :  { %v2748_v40 = vpop.eup %2747 }
0x125b   :  { %v1899_v42 = vmul.f32 %v2748_v40, %v2746_v33 }
0x125d   :  { %2679 = vmatmul.mubr.msk.f32.vlgmr.msra.gmra.mxu1 %vm198_vm9, %v1899_v42  ;;  %v1900_v43 = vadd.f32 %v1899_v42, %v1588_v41 }
0x125e   :  { %2682 = vmatpush3.msra.mxu1 %v3084_v30  ;;  %2683 = vmatprep.mubr.msk.f32.mxu1 %vm2798_vm1, %v2797_v1 }
0x125f   :  { %2686 = vmatprep.subr.mxu1 %v2797_v1 }
0x131d   :  { %v1973_v44 = vpop.f32.mrf.mxu1 }
0x131e   :  { %2684 = vmatmul.mubr.msk.f32.vlgmr.msra.gmra.mxu1 %vm198_vm9, %v1973_v44 }
0x131f   :  { %2687 = vmatpush3.xpose.msk.msra.mxu1 %vm198_vm9, %v2054_v21  ;;  %v2680_v45 = vpop.f32.mrf.mxu1  ;;  %2688 = vmatprep.mubr.msk.f32.mxu1 %vm2798_vm1, %v2797_v1 }
0x1320   :  { %2691 = vmatprep.subr.mxu1 %v2797_v1 }
0x1322   :  { %2689 = vmatmul.mubr.msk.f32.vlgmr.msra.gmra.mxu1 %vm198_vm9, %v2052_v39 }
0x1323   :  { %2693 = vmatprep.mubr.msk.f32.mxu1 %vm2798_vm1, %v2797_v1 }
0x13de   :  { %v2046_v30 = vpop.f32.mrf.mxu1 }
0x13df   :  { %v2050_v46 = vadd.f32 %v2046_v30, %v1808_v22 }
0x13e0   :  { %v2685_v47 = vpop.f32.mrf.mxu1 }
0x13e2   :  { %v2125_v48 = vpop.f32.mrf.mxu1 }
0x13e3   :  { %v2129_v49 = vsel %vm198_vm9, %v2125_v48, -inf }
0x13e4   :  { %2130 = vmax.xlane.f32.xlu1 %v2129_v49  ;;  %v2690_v50 = vpop.f32.mrf.mxu1 }
0x146d   :  { %v2131_v51 = vpop.xlane.xlu1 %2130 }
0x146e   :  { %v2132_v52 = vsub.f32 %v2125_v48, %v2131_v51 }
0x1470   :  { %v2133_v53 = vmul.f32 1.442695, %v2132_v52 }
0x1472   :  { %2749 = vpow2.f32 %v2133_v53 }
0x147f   :  { %v2750_v54 = vpop.eup %2749 }
0x1480   :  { %v2135_v55 = vsel %vm198_vm9, %v2750_v54, 0.0 }
0x1481   :  { %2136 = vadd.xlane.f32.xlu0 %v2135_v55 }
0x1497   :  { %2141 = vrot.lane.b32.xlu0 %v3140_v11, %s2809_s0 }
0x150a   :  { %v2137_v56 = vpop.xlane.xlu0 %2136 }
0x150b   :  { %2751 = vrcp.f32 %v2137_v56 }
0x150e   :  { %v2142_v57 = vpop.permute.xlu0 %2141 }
0x150f   :  { %2692 = vmatpush3.msra.mxu1 %v2142_v57 }
0x1510   :  { %2696 = vmatprep.subr.mxu1 %v2797_v1 }
0x1518   :  { %v2752_v58 = vpop.eup %2751 }
0x1519   :  { %v2139_v59 = vmul.f32 %v2752_v58, %v2750_v54 }
0x151b   :  { %2694 = vmatmul.mubr.msk.f32.vlgmr.msra.gmra.mxu1 %vm198_vm9, %v2139_v59  ;;  %v2140_v60 = vadd.f32 %v2139_v59, %v1900_v43 }
0x151c   :  { %2697 = vmatpush3.msra.mxu1 %v3152_v35  ;;  %2698 = vmatprep.mubr.msk.f32.mxu1 %vm2798_vm1, %v2797_v1 }
0x151d   :  { %v2291_v61 = vmul.f32 0.25, %v2140_v60 }
0x151f   :  { %2360 = vst.msk [vmem:[#allocation4 + $0x8] sm:$0xff] %vm198_vm9, %v2291_v61 }
0x15db   :  { %v2213_v11 = vpop.f32.mrf.mxu1 }
0x15dc   :  { %2699 = vmatmul.mubr.msk.f32.vlgmr.msra.gmra.mxu1 %vm198_vm9, %v2213_v11 }
0x15dd   :  { %v2695_v62 = vpop.f32.mrf.mxu1 }
0x15de   :  { %2764 = shalt.err (!%p2761_p4)
}
0x15df   :  { %s2812_s2 = smov 128   ;;  %s2813_s17 = smov 8  }
0x15e0   :  { %2384 = dma.vmem_to_hbm [thread:$0]  %s2379_s15, 256, %s3300_s6, [#allocation5], %s2812_s2, %s2812_s2, %s2813_s17  }
0x15e1   :  { %s2814_s6 = smov [#allocation2]  }
0x15e2   :  { %s2366_s24 = sshll.u32 %s2814_s6, 4  ;;  %s2367_s24 = int_to_ptr.vmem [resolvable:$true] %s2366_s24 }
0x15e3   :  { %s2773_s25 = scalar_lea.vmem %s2367_s24, 256  ;;  %p2778_p6 = scmp.lt.s32.totalorder %s2367_s24, %s2367_s24 }
0x15e4   :  { %p2774_p5 = scmp.ne.s32.totalorder %s2367_s24, %s2773_s25  ;;  %p2779_p7 = scmp.lt.s32.totalorder %s2773_s25, %s2773_s25 }
0x15e6   :  { %p2780_p8 = por %p2779_p7, %p2778_p6 }
0x15e8   :  { %p2781_p9 = pnand %p2780_p8, %p2774_p5 }
0x169c   :  { %v2286_v1 = vpop.f32.mrf.mxu1 }
0x169d   :  { %v2290_v35 = vadd.f32 %v2286_v1, %v2050_v46 }
0x169e   :  { %v2700_v63 = vpop.f32.mrf.mxu1 }
0x169f   :  { %v2292_v0 = vadd.f32 %v3177_v28, %v2290_v35 }
0x16a1   :  { %v2294_v2 = vcombine.high %v2292_v0, %v2292_v0  ;;  %v2301_v3 = vrot.slane %v2292_v0, %v3180_v32 }
0x16a3   :  { %v2308_v4 = vrot.slane %v2294_v2, %v3180_v32  ;;  %v2309_v5 = vcombine.high %v2301_v3, %v2301_v3  ;;  %v2317_v8 = vrot.slane %v2301_v3, %v3180_v32 }
0x16a5   :  { %v2310_v9 = vcombine.high %v2308_v4, %v2308_v4  ;;  %v2324_v10 = vrot.slane %v2308_v4, %v3180_v32  ;;  %v2331_v12 = vrot.slane %v2309_v5, %v3180_v32  ;;  %v2339_v13 = vcombine.high %v2317_v8, %v2317_v8  ;;  %2351 = vst.msk [vmem:[#allocation2 + $0x1] sm:$0x1] %vm1220_vm10, %v2317_v8 }
0x16a7   :  { %v2338_v28 = vrot.slane %v2310_v9, %v3180_v32  ;;  %v2340_v14 = vcombine.high %v2324_v10, %v2324_v10  ;;  %v2341_v37 = vcombine.high %v2331_v12, %v2331_v12  ;;  %2352 = vst.msk [vmem:[#allocation2 + $0x3] sm:$0x1] %vm1220_vm10, %v2331_v12  ;;  %2353 = vst.msk [vmem:[#allocation2 + $0x5] sm:$0x1] %vm1220_vm10, %v2339_v13 }
0x16a8   :  { %2355 = vst.msk [vmem:[#allocation2 + $0x9] sm:$0x1] %vm1220_vm10, %v2324_v10 }
0x16a9   :  { %v2342_v15 = vcombine.high %v2338_v28, %v2338_v28  ;;  %2354 = vst.msk [vmem:[#allocation2 + $0x7] sm:$0x1] %vm1220_vm10, %v2341_v37  ;;  %2356 = vst.msk [vmem:[#allocation2 + $0xb] sm:$0x1] %vm1220_vm10, %v2338_v28 }
0x16aa   :  { %2357 = vst.msk [vmem:[#allocation2 + $0xd] sm:$0x1] %vm1220_vm10, %v2340_v14 }
0x16ab   :  { %2358 = vst.msk [vmem:[#allocation2 + $0xf] sm:$0x1] %vm1220_vm10, %v2342_v15 }
0x16ac   :  { %2784 = shalt.err (!%p2781_p9)
}
0x16ad   :  { %s2815_s26 = smov 32   ;;  %s2816_s7 = smov 2  }
0x16ae   :  { %2372 = dma.vmem_to_hbm [thread:$0]  %s2367_s24, 256, %s3299_s5, [#allocation3], %s2815_s26, %s2815_s26, %s2816_s7  }
0x16af   :  { %2793 = dma.done.wait [#allocation3], 256  }
0x16b0   :  { %2794 = vsyncadd [#allocation3], 4294967040 }
0x16b1   :  { %2795 = dma.done.wait [#allocation5], 256  }
0x16b2   :  { %2796 = vsyncadd [#allocation5], 4294967040 }
0x16b3   :  { %2391 = vsyncpa [#allocation3], 1 }
0x16b4   :  { %2392 = vsyncpa [#allocation5], 1 }

</bundles_post_ra>
